<compile_context>
chip_gen: v5e
topology: v5e:2x2
jax: 0.10.0
libtpu: 0.0.40
codegen_flags: <defaults>
</compile_context>

<pallas_src>
import functools

import jax
import jax.numpy as jnp
from jax import lax
from jax.experimental import pallas as pl
from jax.experimental.pallas import tpu as pltpu


_LANE = 128


def _round_up(x, m):
    return ((x + m - 1) // m) * m


def _cparams(dim_sem, vmem_limit):
    return pltpu.CompilerParams(dimension_semantics=dim_sem,
                                vmem_limit_bytes=vmem_limit)


def _pick_tiling(n):
    """Generation-aware row tile + scoped-VMEM limit (v5e/v6e vs v7x)."""
    n_pad = _round_up(n, _LANE)
    try:
        vmem_cap = int(pltpu.get_tpu_info().vmem_capacity_bytes)
    except Exception:
        vmem_cap = None
    if vmem_cap is not None and vmem_cap >= 100 * 1024 * 1024:
        # v5e / v6e: 128 MiB physical VMEM -> bigger tiles, fewer re-streams
        tm_target, vmem_limit = 512, 96 * 1024 * 1024
    elif vmem_cap is not None:
        # v7x: 64 MiB per TensorCore
        tm_target, vmem_limit = 256, 48 * 1024 * 1024
    else:
        # unknown backend -> conservative
        tm_target, vmem_limit = 256, 32 * 1024 * 1024
    tm = min(tm_target, n_pad)
    n_pad = _round_up(n_pad, tm)
    # On v7x make sure the "parallel" i axis spans both TensorCores.
    if vmem_cap is not None and vmem_cap < 100 * 1024 * 1024:
        if n_pad // tm < 2 and tm > _LANE:
            tm //= 2
    return n_pad, tm, vmem_limit


# ---------------------------------------------------------------------------
# Kernel 1: xw1 = X @ W1, gridded (row tile, feature-contraction tile)
# ---------------------------------------------------------------------------
def _xw1_kernel(x_ref, w_ref, o_ref, acc_ref):
    @pl.when(pl.program_id(1) == 0)
    def _():
        acc_ref[...] = jnp.zeros_like(acc_ref)

    acc_ref[...] += jnp.dot(x_ref[...], w_ref[...],
                            preferred_element_type=jnp.float32)

    @pl.when(pl.program_id(1) == pl.num_programs(1) - 1)
    def _():
        o_ref[...] = acc_ref[...].astype(o_ref.dtype)


# ---------------------------------------------------------------------------
# Kernel 2: GCN layer 1 (fused):  out = relu(A @ Y + b1) @ W2   (bf16 output)
#   grid = (i rows, k contraction); A, Y, W2 streamed as bf16, f32 scratch acc
# ---------------------------------------------------------------------------
def _gcn_layer1_kernel(a_ref, y_ref, b_ref, w2_ref, o_ref, acc_ref):
    @pl.when(pl.program_id(1) == 0)
    def _():
        acc_ref[...] = jnp.zeros_like(acc_ref)

    acc_ref[...] += jnp.dot(a_ref[...], y_ref[...],
                            preferred_element_type=jnp.float32)

    @pl.when(pl.program_id(1) == pl.num_programs(1) - 1)
    def _():
        h = jnp.maximum(acc_ref[...] + b_ref[...], 0.0).astype(jnp.bfloat16)
        o_ref[...] = jnp.dot(h, w2_ref[...],
                             preferred_element_type=jnp.float32).astype(o_ref.dtype)


# ---------------------------------------------------------------------------
# Kernel 3: GCN layer 2:  z = A @ Y + b2   (f32 output)
# ---------------------------------------------------------------------------
def _gcn_layer2_kernel(a_ref, y_ref, b_ref, o_ref, acc_ref):
    @pl.when(pl.program_id(1) == 0)
    def _():
        acc_ref[...] = jnp.zeros_like(acc_ref)

    acc_ref[...] += jnp.dot(a_ref[...], y_ref[...],
                            preferred_element_type=jnp.float32)

    @pl.when(pl.program_id(1) == pl.num_programs(1) - 1)
    def _():
        o_ref[...] = acc_ref[...] + b_ref[...]


# ---------------------------------------------------------------------------
# Kernel 4: fused stick-breaking VQ + KL(dist_probs || pi), row-tiled over N.
#   e_sq and sum_i(log pi_i) are precomputed on the host side; the row
#   validity mask is computed in-registers from program_id.
# ---------------------------------------------------------------------------
def _vq_kl_kernel(z_ref, e_ref, esq_ref, lps_ref, q_ref, p_ref, vq_ref, kl_ref,
                  *, n_codes, n_real, n_prior, vq_scale):
    i = pl.program_id(0)

    @pl.when(i == 0)
    def _():
        vq_ref[...] = jnp.zeros_like(vq_ref)
        kl_ref[...] = jnp.zeros_like(kl_ref)

    z = z_ref[...]                                      # (T, Dp) f32
    e = e_ref[...]                                      # (Kp, Dp) f32
    t = z.shape[0]
    kp = e.shape[0]

    z_sq = jnp.sum(z * z, axis=-1, keepdims=True)                       # (T, 1)
    cross = lax.dot_general(z, e, (((1,), (1,)), ((), ())),
                            preferred_element_type=jnp.float32)          # (T, Kp)
    d = z_sq + esq_ref[...] - 2.0 * cross                                # (T, Kp)

    col = lax.broadcasted_iota(jnp.int32, (t, kp), 1)
    d = jnp.where(col < n_codes, d, 1e30)               # mask padded codebook rows

    d_min = jnp.min(d, axis=-1, keepdims=True)
    idx = jnp.min(jnp.where(d == d_min, col, kp), axis=-1, keepdims=True)
    onehot = (col == idx).astype(jnp.float32)                            # (T, Kp)
    q = jnp.dot(onehot, e, preferred_element_type=jnp.float32)           # (T, Dp)

    d_shift = d - d_min
    expd = jnp.exp(-d_shift)
    denom = jnp.sum(expd, axis=-1, keepdims=True)                        # (T, 1)
    probs = expd / denom                                 # exact softmax(-d)

    q_ref[...] = q
    p_ref[...] = probs

    # row validity mask, computed in-registers (no lane-width-1 DMA stream)
    row = i * t + lax.broadcasted_iota(jnp.int32, (t, 1), 0)
    rmask = (row < n_real).astype(jnp.float32)                           # (T, 1)

    # vq loss: (1+beta) * mean((q - z)^2); padded D columns are exactly zero.
    sq = (q - z) ** 2
    vq_ref[...] += jnp.reshape(jnp.sum(sq * rmask), (1, 1))

    # KL(dist_probs || pi): analytic log-softmax, one log per row.
    dp = probs * rmask
    logp = -d_shift - jnp.log(denom)                                     # (T, Kp)
    term1 = jnp.sum(dp * logp)
    colsum = jnp.sum(dp, axis=0, keepdims=True)                          # (1, Kp)
    term2 = jnp.sum(colsum * lps_ref[...])               # lps = sum_i log(pi_i)
    kl_ref[...] += jnp.reshape(term1 - term2 / n_prior, (1, 1))

    @pl.when(i == pl.num_programs(0) - 1)
    def _():
        vq_ref[...] = vq_ref[...] * vq_scale


# ---------------------------------------------------------------------------
# Kernel 5: fused pos+neg inner-product-decoder BCE, edge-tiled.
#   Edge streams are concatenated [pos | neg]; the per-row sign and 1/count
#   weights are derived in-registers from program_id (softplus-form BCE).
# ---------------------------------------------------------------------------
def _edge_bce_kernel(zs_ref, zd_ref, out_ref, *, n_pos, n_neg):
    i = pl.program_id(0)

    @pl.when(i == 0)
    def _():
        out_ref[...] = jnp.zeros_like(out_ref)

    zs = zs_ref[...].astype(jnp.float32)
    zd = zd_ref[...].astype(jnp.float32)
    t = zs.shape[0]
    logit = jnp.sum(zs * zd, axis=-1, keepdims=True)                     # (T, 1)

    row = i * t + lax.broadcasted_iota(jnp.int32, (t, 1), 0)
    is_pos = row < n_pos
    is_valid = row < (n_pos + n_neg)
    w = jnp.where(is_pos, 1.0 / n_pos,
                  jnp.where(is_valid, 1.0 / n_neg, 0.0))

    # pos: softplus(-logit) = -log sigmoid(logit); neg: softplus(logit)
    lin = jnp.where(is_pos, jnp.maximum(-logit, 0.0), jnp.maximum(logit, 0.0))
    loss = lin + jnp.log(1.0 + jnp.exp(-jnp.abs(logit)))
    out_ref[...] += jnp.reshape(jnp.sum(loss * w), (1, 1))


# ---------------------------------------------------------------------------
# JAX glue
# ---------------------------------------------------------------------------
def _normalized_adjacency_padded(pos_edge_index, num_nodes, n_pad):
    # Built directly at the padded size; normalize + bf16 cast fuse into one
    # elementwise pass (no extra O(N^2) pad/astype materializations).
    # TODO(synk): replace the dense N^2 build with a sparse SpMM (segment-sum
    # over scalar-prefetched edge offsets) for large graphs.
    src, dst = pos_edge_index[0], pos_edge_index[1]
    a = jnp.zeros((n_pad, n_pad), jnp.float32)
    a = a.at[src, dst].set(1.0)
    a = a.at[dst, src].set(1.0)                               # undirected edges
    diag = (jnp.arange(n_pad) < num_nodes).astype(jnp.float32)
    a = a + jnp.diag(diag)                                    # self-loops (real rows)
    deg = jnp.sum(a, axis=-1)
    d_inv_sqrt = 1.0 / jnp.sqrt(jnp.maximum(deg, 1.0))
    return (a * d_inv_sqrt[:, None] * d_inv_sqrt[None, :]).astype(jnp.bfloat16)


def _sample_pi(num_latent, prior_alpha, prior_beta, num=50, seed=2000):
    # Stick-breaking construction of pi (torch.manual_seed(2000)'s Beta stream
    # cannot be reproduced bit-exact; distributionally equivalent).
    key = jax.random.PRNGKey(seed)
    v = jax.random.beta(key, prior_alpha, prior_beta, shape=(num, num_latent))
    v = v.astype(jnp.float32)
    remaining = jnp.cumprod(1.0 - v, axis=1)
    pi = jnp.concatenate([v[:, :1], v[:, 1:] * remaining[:, :-1]], axis=1)
    return jnp.clip(pi, 0.001, 0.999)


def init_params(key, input_dim, hidden_dim, latent_dim, num_latent):
    k1, k2, k3 = jax.random.split(key, 3)
    glorot = lambda k, fi, fo: (
        jax.random.normal(k, (fi, fo), jnp.float32) * jnp.sqrt(2.0 / (fi + fo))
    )
    return {
        "w1": glorot(k1, input_dim, hidden_dim),
        "b1": jnp.zeros((1, hidden_dim), jnp.float32),
        "w2": glorot(k2, hidden_dim, latent_dim),
        "b2": jnp.zeros((1, latent_dim), jnp.float32),
        "codebook": jax.random.uniform(
            k3, (num_latent, latent_dim), jnp.float32,
            minval=-1.0 / num_latent, maxval=1.0 / num_latent,
        ),
    }


def sb_vq_vae_forward(params, x, pos_edge_index, neg_edge_index,
                      *, beta, prior_alpha, prior_beta):
    n, input_dim = x.shape
    hidden_dim = params["w1"].shape[1]
    latent_dim = params["w2"].shape[1]
    num_latent = params["codebook"].shape[0]
    num_prior = 50

    # ---- padded / tiled sizes (generation-aware) -----------------------------
    n_pad, tm, vmem_limit = _pick_tiling(n)
    tk = tm                              # contraction tile of A
    f_pad0 = _round_up(input_dim, _LANE)
    tf = min(512, f_pad0)                # feature-contraction tile for X @ W1
    f_pad = _round_up(f_pad0, tf)
    h_pad = _round_up(hidden_dim, _LANE)
    d_pad = _round_up(latent_dim, _LANE)
    k_pad = _round_up(num_latent, _LANE)

    # ---- adjacency + padded / bf16 operands -----------------------------------
    a = _normalized_adjacency_padded(pos_edge_index, n, n_pad)

    x_p = jnp.pad(x.astype(jnp.float32),
                  ((0, n_pad - n), (0, f_pad - input_dim))).astype(jnp.bfloat16)
    w1_p = jnp.pad(params["w1"],
                   ((0, f_pad - input_dim), (0, h_pad - hidden_dim))
                   ).astype(jnp.bfloat16)
    b1_p = jnp.pad(params["b1"], ((0, 0), (0, h_pad - hidden_dim)))
    w2_p = jnp.pad(params["w2"],
                   ((0, h_pad - hidden_dim), (0, d_pad - latent_dim))
                   ).astype(jnp.bfloat16)
    b2_p = jnp.pad(params["b2"], ((0, 0), (0, d_pad - latent_dim)))
    e_p = jnp.pad(params["codebook"],
                  ((0, k_pad - num_latent), (0, d_pad - latent_dim)))
    e_sq = jnp.sum(e_p * e_p, axis=-1).reshape(1, k_pad)

    # ---- encoder ---------------------------------------------------------------
    # TODO(synk): mark grid-invariant operands with pipeline_mode=pl.Buffered(1)
    # once single-buffered input pipelining is available on all targets.
    xw1 = pl.pallas_call(
        _xw1_kernel,
        out_shape=jax.ShapeDtypeStruct((n_pad, h_pad), jnp.bfloat16),
        grid=(n_pad // tm, f_pad // tf),
        in_specs=[pl.BlockSpec((tm, tf), lambda i, k: (i, k)),
                  pl.BlockSpec((tf, h_pad), lambda i, k: (k, 0))],
        out_specs=pl.BlockSpec((tm, h_pad), lambda i, k: (i, 0)),
        scratch_shapes=[pltpu.VMEM((tm, h_pad), jnp.float32)],
        compiler_params=_cparams(("parallel", "arbitrary"), vmem_limit),
    )(x_p, w1_p)

    hw2 = pl.pallas_call(
        _gcn_layer1_kernel,
        out_shape=jax.ShapeDtypeStruct((n_pad, d_pad), jnp.bfloat16),
        grid=(n_pad // tm, n_pad // tk),
        in_specs=[pl.BlockSpec((tm, tk), lambda i, k: (i, k)),
                  pl.BlockSpec((tk, h_pad), lambda i, k: (k, 0)),
                  pl.BlockSpec((1, h_pad), lambda i, k: (0, 0)),
                  pl.BlockSpec((h_pad, d_pad), lambda i, k: (0, 0))],
        out_specs=pl.BlockSpec((tm, d_pad), lambda i, k: (i, 0)),
        scratch_shapes=[pltpu.VMEM((tm, h_pad), jnp.float32)],
        compiler_params=_cparams(("parallel", "arbitrary"), vmem_limit),
    )(a, xw1, b1_p, w2_p)

    z = pl.pallas_call(
        _gcn_layer2_kernel,
        out_shape=jax.ShapeDtypeStruct((n_pad, d_pad), jnp.float32),
        grid=(n_pad // tm, n_pad // tk),
        in_specs=[pl.BlockSpec((tm, tk), lambda i, k: (i, k)),
                  pl.BlockSpec((tk, d_pad), lambda i, k: (k, 0)),
                  pl.BlockSpec((1, d_pad), lambda i, k: (0, 0))],
        out_specs=pl.BlockSpec((tm, d_pad), lambda i, k: (i, 0)),
        scratch_shapes=[pltpu.VMEM((tm, d_pad), jnp.float32)],
        compiler_params=_cparams(("parallel", "arbitrary"), vmem_limit),
    )(a, hw2, b2_p)

    # ---- prior samples (sum_i log pi_i hoisted out of the kernel) ---------------
    pi = _sample_pi(num_latent, prior_alpha, prior_beta, num=num_prior)
    logpi_sum = jnp.pad(jnp.sum(jnp.log(pi), axis=0).reshape(1, num_latent),
                        ((0, 0), (0, k_pad - num_latent)))

    # ---- fused VQ + KL, row-tiled ------------------------------------------------
    tv = tm
    vq_scale = (1.0 + float(beta)) / float(n * latent_dim)

    q_p, probs_p, vq_out, kl_out = pl.pallas_call(
        functools.partial(_vq_kl_kernel, n_codes=num_latent, n_real=n,
                          n_prior=num_prior, vq_scale=vq_scale),
        out_shape=(jax.ShapeDtypeStruct((n_pad, d_pad), jnp.float32),
                   jax.ShapeDtypeStruct((n_pad, k_pad), jnp.float32),
                   jax.ShapeDtypeStruct((1, 1), jnp.float32),
                   jax.ShapeDtypeStruct((1, 1), jnp.float32)),
        grid=(n_pad // tv,),
        in_specs=[pl.BlockSpec((tv, d_pad), lambda i: (i, 0)),
                  pl.BlockSpec((k_pad, d_pad), lambda i: (0, 0)),
                  pl.BlockSpec((1, k_pad), lambda i: (0, 0)),
                  pl.BlockSpec((1, k_pad), lambda i: (0, 0))],
        out_specs=(pl.BlockSpec((tv, d_pad), lambda i: (i, 0)),
                   pl.BlockSpec((tv, k_pad), lambda i: (i, 0)),
                   pl.BlockSpec((1, 1), lambda i: (0, 0)),
                   pl.BlockSpec((1, 1), lambda i: (0, 0))),
        compiler_params=_cparams(("arbitrary",), vmem_limit),
    )(z, e_p, e_sq, logpi_sum)
    vq_loss = vq_out[0, 0]
    kl_prior1_loss = kl_out.reshape((1,))

    # ---- reconstruction loss: single fused pos+neg edge-BCE kernel ----------------
    # TODO(synk): move the row gathers into the kernel (scalar-prefetched edge
    # indices driving per-row DMAs from an HBM-resident `quantized`) to cut the
    # gather HBM round-trip for very large edge sets.
    n_pos = int(pos_edge_index.shape[1])
    n_neg = int(neg_edge_index.shape[1])
    n_edges = n_pos + n_neg
    src = jnp.concatenate([pos_edge_index[0], neg_edge_index[0]])
    dst = jnp.concatenate([pos_edge_index[1], neg_edge_index[1]])
    te = min(1024, _round_up(n_edges, _LANE))
    e_pad = _round_up(n_edges, te)
    zs = jnp.pad(jnp.take(q_p, src, axis=0).astype(jnp.bfloat16),
                 ((0, e_pad - n_edges), (0, 0)))
    zd = jnp.pad(jnp.take(q_p, dst, axis=0).astype(jnp.bfloat16),
                 ((0, e_pad - n_edges), (0, 0)))

    recon_out = pl.pallas_call(
        functools.partial(_edge_bce_kernel, n_pos=n_pos, n_neg=n_neg),
        out_shape=jax.ShapeDtypeStruct((1, 1), jnp.float32),
        grid=(e_pad // te,),
        in_specs=[pl.BlockSpec((te, d_pad), lambda i: (i, 0)),
                  pl.BlockSpec((te, d_pad), lambda i: (i, 0))],
        out_specs=pl.BlockSpec((1, 1), lambda i: (0, 0)),
        compiler_params=_cparams(("arbitrary",), vmem_limit),
    )(zs, zd)
    recon_loss = recon_out[0, 0]

    # ---- slice padded outputs back to module shapes ---------------------------------
    latent_embedding = z[:n, :latent_dim]
    quantized = q_p[:n, :latent_dim]
    dist_probs = probs_p[:n, :num_latent]

    return (latent_embedding, quantized, params["codebook"], recon_loss,
            kl_prior1_loss, dist_probs, pi, vq_loss)


if __name__ == "__main__":
    # small synthetic problem
    N = 16
    INPUT_DIM = 8
    HIDDEN_DIM = 32
    LATENT_DIM = 16
    NUM_LATENT = 8
    E_POS = 32
    E_NEG = 16
    BETA = 0.25
    PRIOR_ALPHA = 1.0
    PRIOR_BETA = 5.0

    key = jax.random.PRNGKey(0)
    kx, kp, kn, kw = jax.random.split(key, 4)
    x = jax.random.normal(kx, (N, INPUT_DIM), jnp.float32)
    pos_edge_index = jax.random.randint(kp, (2, E_POS), 0, N, dtype=jnp.int32)
    neg_edge_index = jax.random.randint(kn, (2, E_NEG), 0, N, dtype=jnp.int32)
    params = init_params(kw, INPUT_DIM, HIDDEN_DIM, LATENT_DIM, NUM_LATENT)

    outputs = sb_vq_vae_forward(
        params, x, pos_edge_index, neg_edge_index,
        beta=BETA, prior_alpha=PRIOR_ALPHA, prior_beta=PRIOR_BETA,
    )
    outputs = jax.block_until_ready(outputs)

    (latent_embedding, quantized, codebook, recon_loss,
     kl_prior1_loss, dist_probs, pi, vq_loss) = outputs
    assert latent_embedding.shape == (N, LATENT_DIM)
    assert quantized.shape == (N, LATENT_DIM)
    assert codebook.shape == (NUM_LATENT, LATENT_DIM)
    assert dist_probs.shape == (N, NUM_LATENT)
    assert pi.shape == (50, NUM_LATENT)
    assert kl_prior1_loss.shape == (1,)
    assert bool(jnp.isfinite(recon_loss))
    assert bool(jnp.isfinite(vq_loss))
    assert bool(jnp.all(jnp.isfinite(dist_probs)))
    print("KERNEL_OK")
</pallas_src>

<mosaic_0001>
module attributes {stable_mosaic.version = 11 : i64} {
  func.func @_xw1_kernel(%arg0: i32, %arg1: i32, %arg2: memref<128x128xbf16, #tpu.memory_space<vmem>>, %arg3: memref<128x128xbf16, #tpu.memory_space<vmem>>, %arg4: memref<128x128xbf16, #tpu.memory_space<vmem>>, %arg5: memref<128x128xf32, #tpu.memory_space<vmem>>) attributes {dimension_semantics = [#tpu.dimension_semantics<parallel>, #tpu.dimension_semantics<arbitrary>], iteration_bounds = array<i64: 1, 1>, scalar_prefetch = 0 : i64, scratch_operands = 1 : i64, tpu.core_type = #tpu.core_type<tc>, window_params = [{transform_indices = @transform_0, window_bounds = array<i64: 128, 128>}, {transform_indices = @transform_1, window_bounds = array<i64: 128, 128>}, {transform_indices = @transform_2, window_bounds = array<i64: 128, 128>}]} {
    %c0_i32 = arith.constant 0 : i32
    %0 = arith.cmpi eq, %arg1, %c0_i32 : i32
    %1 = arith.extui %0 : i1 to i32
    %c0_i32_0 = arith.constant 0 : i32
    %2 = arith.cmpi ne, %1, %c0_i32_0 : i32
    scf.if %2 {
      %cst_10 = arith.constant 0.000000e+00 : f32
      %12 = vector.broadcast %cst_10 : f32 to vector<128x128xf32>
      %c0_11 = arith.constant 0 : index
      %c0_12 = arith.constant 0 : index
      %13 = vector.load %arg5[%c0_11, %c0_12] : memref<128x128xf32, #tpu.memory_space<vmem>>, vector<128x128xf32>
      tpu.vector_store %arg5[%c0_11, %c0_12], %12 {strides = array<i32>} : memref<128x128xf32, #tpu.memory_space<vmem>>, vector<128x128xf32>,
    } else {
    }
    %c0 = arith.constant 0 : index
    %c0_1 = arith.constant 0 : index
    %3 = vector.load %arg5[%c0, %c0_1] : memref<128x128xf32, #tpu.memory_space<vmem>>, vector<128x128xf32>
    %c0_2 = arith.constant 0 : index
    %c0_3 = arith.constant 0 : index
    %4 = vector.load %arg2[%c0_2, %c0_3] : memref<128x128xbf16, #tpu.memory_space<vmem>>, vector<128x128xbf16>
    %c0_4 = arith.constant 0 : index
    %c0_5 = arith.constant 0 : index
    %5 = vector.load %arg3[%c0_4, %c0_5] : memref<128x128xbf16, #tpu.memory_space<vmem>>, vector<128x128xbf16>
    %cst = arith.constant dense<0.000000e+00> : vector<128x128xf32>
    %6 = tpu.matmul %4, %5, %cst {dimension_numbers = #tpu.dot_dimension_numbers<[1], [0], [0], [1], [0, 0, 1, 1], [], []>} : vector<128x128xbf16>, vector<128x128xbf16>, vector<128x128xf32> -> vector<128x128xf32>
    %7 = arith.addf %3, %6 : vector<128x128xf32>
    %c0_6 = arith.constant 0 : index
    %c0_7 = arith.constant 0 : index
    %8 = vector.load %arg5[%c0_6, %c0_7] : memref<128x128xf32, #tpu.memory_space<vmem>>, vector<128x128xf32>
    tpu.vector_store %arg5[%c0_6, %c0_7], %7 {strides = array<i32>} : memref<128x128xf32, #tpu.memory_space<vmem>>, vector<128x128xf32>,
    %c0_i32_8 = arith.constant 0 : i32
    %9 = arith.cmpi eq, %arg1, %c0_i32_8 : i32
    %10 = arith.extui %9 : i1 to i32
    %c0_i32_9 = arith.constant 0 : i32
    %11 = arith.cmpi ne, %10, %c0_i32_9 : i32
    scf.if %11 {
      %c0_10 = arith.constant 0 : index
      %c0_11 = arith.constant 0 : index
      %12 = vector.load %arg5[%c0_10, %c0_11] : memref<128x128xf32, #tpu.memory_space<vmem>>, vector<128x128xf32>
      %13 = arith.truncf %12 : vector<128x128xf32> to vector<128x128xbf16>
      %c0_12 = arith.constant 0 : index
      %c0_13 = arith.constant 0 : index
      %14 = vector.load %arg4[%c0_12, %c0_13] : memref<128x128xbf16, #tpu.memory_space<vmem>>, vector<128x128xbf16>
      tpu.vector_store %arg4[%c0_12, %c0_13], %13 {strides = array<i32>} : memref<128x128xbf16, #tpu.memory_space<vmem>>, vector<128x128xbf16>,
    } else {
    }
    return
  }
  func.func @transform_0(%arg0: i32, %arg1: i32) -> (i32, i32) {
    %c0_i32 = arith.constant 0 : i32
    return %arg0, %arg1 : i32, i32
  }
  func.func @transform_1(%arg0: i32, %arg1: i32) -> (i32, i32) {
    %c0_i32 = arith.constant 0 : i32
    %c0_i32_0 = arith.constant 0 : i32
    return %arg1, %c0_i32 : i32, i32
  }
  func.func @transform_2(%arg0: i32, %arg1: i32) -> (i32, i32) {
    %c0_i32 = arith.constant 0 : i32
    %c0_i32_0 = arith.constant 0 : i32
    return %arg0, %c0_i32 : i32, i32
  }
}

</mosaic_0001>

<bundles_post_ra>
// kernel: tpu_custom_call.1
= control target key start
LH: loop header
LB: loop body
LE: loop exit
PB: predicated region body
PF: predicated region fallthrough
CT: control target
= control target key end

     0   :  { %7 = vsyncpa [#allocation4], 0  ;;  %s632_s0 = inlined_call_operand.hbm [shape: bf16[128,128], index: 0, kind: input, shape index: {}]   ;;  %s633_s1 = inlined_call_operand.hbm [shape: bf16[128,128], index: 1, kind: input, shape index: {}]   ;;  %s634_s2 = inlined_call_operand.hbm [shape: bf16[128,128], index: 2, kind: output, shape index: {}]  }
   0x1   :  { %8 = vsyncpa [#allocation7], 0 }
   0x2   :  { %9 = vsyncpa [#allocation5], 0  ;;  %s14_s11 = sshll.u32 %s632_s0, 4  ;;  %s594_s12 = smov [#allocation3]   ;;  %s15_s11 = int_to_ptr.hbm [resolvable:$true] %s14_s11 }
   0x3   :  { %s16_s13 = sshll.u32 %s594_s12, 4  ;;  %s27_s16 = sshll.u32 %s633_s1, 4  ;;  %s17_s13 = int_to_ptr.vmem [resolvable:$true] %s16_s13  ;;  %s28_s16 = int_to_ptr.hbm [resolvable:$true] %s27_s16 }
   0x4   :  { %s595_s17 = smov 64   ;;  %s596_s18 = smov 4  }
   0x5   :  { %22 = dma.hbm_to_vmem [thread:$0]  %s15_s11, 1024, %s17_s13, [#allocation4], %s595_s17, %s595_s17, %s596_s18  }
   0x6   :  { %s597_s19 = smov [#allocation6]  }
   0x7   :  { %s29_s20 = sshll.u32 %s597_s19, 4  ;;  %s30_s20 = int_to_ptr.vmem [resolvable:$true] %s29_s20 }
   0x8   :  { %35 = dma.hbm_to_vmem [thread:$0]  %s28_s16, 1024, %s30_s20, [#allocation7], %s595_s17, %s595_s17, %s596_s18  }
   0x9   :  { %588 = dma.done.wait [#allocation4], 1024  }
   0xa   :  { %589 = vsyncadd [#allocation4], 4294966272 }
   0xb   :  { %590 = dma.done.wait [#allocation7], 1024  }
   0xc   :  { %591 = vsyncadd [#allocation7], 4294966272  ;;  %v439_v0 = vld [vmem:[#allocation6 + $0x38] sm:$0xff]  ;;  %v438_v1 = vld [vmem:[#allocation6 + $0x30] sm:$0xff]  ;;  %s598_s0 = smov [#allocation8]   ;;  %s346_s23 = sshll.u32 %s634_s2, 4  ;;  %s347_s23 = int_to_ptr.hbm [resolvable:$true] %s346_s23 }
   0xd   :  { %208 = vmatpush.bf16.msra.mxu0 %v439_v0  ;;  %487 = vmatpush.bf16.msra.mxu1 %v439_v0  ;;  %v437_v2 = vld [vmem:[#allocation6 + $0x28] sm:$0xff]  ;;  %v436_v3 = vld [vmem:[#allocation6 + $0x20] sm:$0xff]  ;;  %v435_v4 = vld [vmem:[#allocation6 + $0x18] sm:$0xff]  ;;  %s344_s1 = sshll.u32 %s598_s0, 4  ;;  %s345_s1 = int_to_ptr.vmem [resolvable:$true] %s344_s1 }
   0xe   :  { %488 = vmatpush.bf16.msra.mxu2 %v439_v0  ;;  %489 = vmatpush.bf16.msra.mxu3 %v439_v0  ;;  %v434_v5 = vld [vmem:[#allocation6 + $0x10] sm:$0xff]  ;;  %v433_v6 = vld [vmem:[#allocation6 + $0x8] sm:$0xff]  ;;  %v432_v7 = vld [vmem:[#allocation6] sm:$0xff] }
   0xf   :  { %v424_v8 = vld [vmem:[#allocation3] sm:$0xff]  ;;  %v426_v9 = vld [vmem:[#allocation3 + $0x10] sm:$0xff]  ;;  %v425_v12 = vld [vmem:[#allocation3 + $0x8] sm:$0xff] }
  0x10   :  { %v428_v10 = vld [vmem:[#allocation3 + $0x20] sm:$0xff]  ;;  %v430_v11 = vld [vmem:[#allocation3 + $0x30] sm:$0xff]  ;;  %v427_v13 = vld [vmem:[#allocation3 + $0x18] sm:$0xff] }
  0x11   :  { %209 = vmatpush.bf16.msra.mxu0 %v438_v1  ;;  %490 = vmatpush.bf16.msra.mxu1 %v438_v1  ;;  %v429_v14 = vld [vmem:[#allocation3 + $0x28] sm:$0xff]  ;;  %v431_v15 = vld [vmem:[#allocation3 + $0x38] sm:$0xff] }
  0x12   :  { %491 = vmatpush.bf16.msra.mxu2 %v438_v1  ;;  %492 = vmatpush.bf16.msra.mxu3 %v438_v1 }
  0x15   :  { %210 = vmatpush.bf16.msra.mxu0 %v437_v2  ;;  %493 = vmatpush.bf16.msra.mxu1 %v437_v2 }
  0x16   :  { %494 = vmatpush.bf16.msra.mxu2 %v437_v2  ;;  %495 = vmatpush.bf16.msra.mxu3 %v437_v2 }
  0x19   :  { %211 = vmatpush.bf16.msra.mxu0 %v436_v3  ;;  %496 = vmatpush.bf16.msra.mxu1 %v436_v3 }
  0x1a   :  { %497 = vmatpush.bf16.msra.mxu2 %v436_v3  ;;  %498 = vmatpush.bf16.msra.mxu3 %v436_v3 }
  0x1d   :  { %212 = vmatpush.bf16.msra.mxu0 %v435_v4  ;;  %499 = vmatpush.bf16.msra.mxu1 %v435_v4 }
  0x1e   :  { %500 = vmatpush.bf16.msra.mxu2 %v435_v4  ;;  %501 = vmatpush.bf16.msra.mxu3 %v435_v4 }
  0x21   :  { %213 = vmatpush.bf16.msra.mxu0 %v434_v5  ;;  %502 = vmatpush.bf16.msra.mxu1 %v434_v5 }
  0x22   :  { %503 = vmatpush.bf16.msra.mxu2 %v434_v5  ;;  %504 = vmatpush.bf16.msra.mxu3 %v434_v5 }
  0x25   :  { %214 = vmatpush.bf16.msra.mxu0 %v433_v6  ;;  %505 = vmatpush.bf16.msra.mxu1 %v433_v6 }
  0x26   :  { %506 = vmatpush.bf16.msra.mxu2 %v433_v6  ;;  %507 = vmatpush.bf16.msra.mxu3 %v433_v6 }
  0x29   :  { %215 = vmatpush.bf16.msra.mxu0 %v432_v7  ;;  %508 = vmatpush.bf16.msra.mxu1 %v432_v7 }
  0x2a   :  { %509 = vmatpush.bf16.msra.mxu2 %v432_v7  ;;  %510 = vmatpush.bf16.msra.mxu3 %v432_v7 }
  0x2c   :  { %216 = vmatmul.bf16.vlgmr.msra.gmra.mxu0 %v424_v8  ;;  %226 = vmatmul.bf16.vlgmr.msra.gmra.mxu1 %v426_v9 }
  0x2d   :  { %236 = vmatmul.bf16.vlgmr.msra.gmra.mxu2 %v428_v10  ;;  %246 = vmatmul.bf16.vlgmr.msra.gmra.mxu3 %v430_v11 }
  0x3c   :  { %221 = vmatmul.bf16.gmra.mxu0 %v425_v12  ;;  %231 = vmatmul.bf16.gmra.mxu1 %v427_v13 }
  0x3d   :  { %241 = vmatmul.bf16.gmra.mxu2 %v429_v14  ;;  %251 = vmatmul.bf16.gmra.mxu3 %v431_v15 }
  0xa9   :  { %v217_v16 = vpop.f32.mrf.mxu0  ;;  %v227_v17 = vpop.f32.mrf.mxu1 }
  0xb0   :  { %v237_v18 = vpop.f32.mrf.mxu2  ;;  %v247_v19 = vpop.f32.mrf.mxu3 }
  0xb1   :  { %v219_v20 = vpop.f32.mrf.mxu0  ;;  %v229_v21 = vpop.f32.mrf.mxu1 }
  0xb2   :  { %v443_v22 = vpack.c.bf16 %v219_v20, %v217_v16  ;;  %v453_v23 = vpack.c.bf16 %v229_v21, %v227_v17 }
  0xb4   :  { %444 = vst [vmem:[#allocation8] sm:$0xff] %v443_v22  }
  0xb5   :  { %481 = vst [vmem:[#allocation8 + $0x10] sm:$0xff] %v453_v23  }
  0xb8   :  { %v239_v24 = vpop.f32.mrf.mxu2  ;;  %v249_v25 = vpop.f32.mrf.mxu3 }
  0xb9   :  { %v463_v26 = vpack.c.bf16 %v239_v24, %v237_v18  ;;  %v473_v27 = vpack.c.bf16 %v249_v25, %v247_v19  ;;  %v222_v28 = vpop.f32.mrf.mxu0  ;;  %v232_v29 = vpop.f32.mrf.mxu1 }
  0xbb   :  { %483 = vst [vmem:[#allocation8 + $0x20] sm:$0xff] %v463_v26  }
  0xbc   :  { %485 = vst [vmem:[#allocation8 + $0x30] sm:$0xff] %v473_v27  }
  0xc0   :  { %v242_v30 = vpop.f32.mrf.mxu2  ;;  %v252_v31 = vpop.f32.mrf.mxu3 }
  0xc1   :  { %v224_v32 = vpop.f32.mrf.mxu0  ;;  %v234_v33 = vpop.f32.mrf.mxu1 }
  0xc2   :  { %v448_v34 = vpack.c.bf16 %v224_v32, %v222_v28  ;;  %v458_v35 = vpack.c.bf16 %v234_v33, %v232_v29 }
  0xc4   :  { %480 = vst [vmem:[#allocation8 + $0x8] sm:$0xff] %v448_v34  }
  0xc5   :  { %482 = vst [vmem:[#allocation8 + $0x18] sm:$0xff] %v458_v35  }
  0xc8   :  { %v244_v36 = vpop.f32.mrf.mxu2  ;;  %v254_v37 = vpop.f32.mrf.mxu3 }
  0xc9   :  { %v468_v38 = vpack.c.bf16 %v244_v36, %v242_v30  ;;  %v478_v39 = vpack.c.bf16 %v254_v37, %v252_v31 }
  0xcb   :  { %484 = vst [vmem:[#allocation8 + $0x28] sm:$0xff] %v468_v38  }
  0xcc   :  { %486 = vst [vmem:[#allocation8 + $0x38] sm:$0xff] %v478_v39  }
  0xcd   :  { %352 = dma.vmem_to_hbm [thread:$0]  %s345_s1, 1024, %s347_s23, [#allocation5], %s595_s17, %s595_s17, %s596_s18  }
  0xce   :  { %592 = dma.done.wait [#allocation5], 1024  }
  0xcf   :  { %593 = vsyncadd [#allocation5], 4294966272 }
  0xd0   :  { %357 = vsyncpa [#allocation4], 1 }
  0xd1   :  { %358 = vsyncpa [#allocation7], 1 }
  0xd2   :  { %359 = vsyncpa [#allocation5], 1 }

</bundles_post_ra>
